<compile_context>
chip_gen: v6e
topology: v6e:2x2x1
jax: 0.10.0
libtpu: 0.0.40
codegen_flags: <defaults>
</compile_context>

<pallas_src>
import functools

import jax
import jax.numpy as jnp
import numpy as np
from jax.experimental import pallas as pl
from jax.experimental.pallas import tpu as pltpu


def _round_up(x, m):
    return ((x + m - 1) // m) * m


# ----------------------------------------------------------------------------
# Kernel 1: embedding lookup (nn.Embedding forward)
#   - ids (flat, padded) live in SMEM via scalar prefetch
#   - the full table is kept resident in VMEM (constant index_map -> fetched once)
#   - each grid step gathers G rows into a dense (G, E) output block
# ----------------------------------------------------------------------------
def _embed_gather_kernel(ids_ref, table_ref, out_ref, *, block_tokens):
    base = pl.program_id(0) * block_tokens

    def body(g, carry):
        row = ids_ref[base + g]  # scalar read from SMEM
        out_ref[pl.ds(g, 1), :] = table_ref[pl.ds(row, 1), :]
        return carry

    jax.lax.fori_loop(0, block_tokens, body, 0, unroll=False)


def embed_lookup(table, ids, *, max_block_tokens=256):
    """Gather rows of `table` ([V, E]) at integer `ids` (any shape) -> ids.shape + (E,)."""
    V, E = table.shape
    flat = jnp.clip(ids.reshape(-1).astype(jnp.int32), 0, V - 1)  # guard against OOB ids
    N = flat.shape[0]

    G = min(max_block_tokens, _round_up(N, 8))   # tokens per grid step (multiple of 8)
    Np = _round_up(N, G)
    if Np != N:
        flat = jnp.pad(flat, (0, Np - N))        # pad with id 0 (valid row), sliced off below
    num_blocks = Np // G

    # VMEM budget: resident table + double-buffered (G, E) output blocks + margin.
    table_bytes = V * E * table.dtype.itemsize
    needed = table_bytes + 4 * G * E * 4 + (2 << 20)
    vmem_limit = int(min(100 * 2**20, max(32 * 2**20, needed)))
    # TODO(synk): tables larger than ~24-32 MiB need a vocab-tiled (or bf16) table to stay within
    # v7x's 64 MiB VMEM; this implementation assumes the table fits residently.

    out = pl.pallas_call(
        functools.partial(_embed_gather_kernel, block_tokens=G),
        out_shape=jax.ShapeDtypeStruct((Np, E), table.dtype),
        grid_spec=pltpu.PrefetchScalarGridSpec(
            num_scalar_prefetch=1,               # flat ids -> SMEM
            grid=(num_blocks,),
            in_specs=[
                # whole table, constant block index -> loaded to VMEM once and kept resident
                pl.BlockSpec((V, E), lambda i, ids: (0, 0)),
            ],
            out_specs=pl.BlockSpec((G, E), lambda i, ids: (i, 0)),
        ),
        compiler_params=pltpu.CompilerParams(
            dimension_semantics=("parallel",),   # token blocks are independent (2-TC split on v7x)
            vmem_limit_bytes=vmem_limit,
        ),
    )(flat, table)
    return out[:N].reshape(ids.shape + (E,))


# ----------------------------------------------------------------------------
# Kernel 2: numerically-stable softmax over the last dim (F.softmax(logits, -1))
#   - batch axis tiled (TB rows per grid step, "parallel")
#   - class axis padded to a multiple of 128 lanes; padding = -1e30 -> exp == 0
# ----------------------------------------------------------------------------
def _softmax_kernel(x_ref, o_ref):
    x = x_ref[...].astype(jnp.float32)
    m = jnp.max(x, axis=-1, keepdims=True)
    e = jnp.exp(x - m)
    s = jnp.sum(e, axis=-1, keepdims=True)
    o_ref[...] = (e * pl.reciprocal(s)).astype(o_ref.dtype)


def softmax_last_dim(logits, *, max_block_rows=512):
    orig_shape = logits.shape
    C = orig_shape[-1]
    x2 = logits.reshape(-1, C)
    B = x2.shape[0]

    Cp = _round_up(max(C, 1), 128)               # lane-dense class axis
    TB = min(max_block_rows, _round_up(max(B, 1), 8))
    Bp = _round_up(B, TB)

    xp = jnp.pad(
        x2.astype(jnp.float32),
        ((0, Bp - B), (0, Cp - C)),
        constant_values=-1e30,                   # padded classes -> exp underflows to exactly 0
    )

    out = pl.pallas_call(
        _softmax_kernel,
        out_shape=jax.ShapeDtypeStruct((Bp, Cp), jnp.float32),
        grid_spec=pltpu.PrefetchScalarGridSpec(
            num_scalar_prefetch=0,
            grid=(Bp // TB,),
            in_specs=[pl.BlockSpec((TB, Cp), lambda i: (i, 0))],
            out_specs=pl.BlockSpec((TB, Cp), lambda i: (i, 0)),
        ),
        compiler_params=pltpu.CompilerParams(
            dimension_semantics=("parallel",),
        ),
    )(xp)
    return out[:B, :C].reshape(orig_shape).astype(logits.dtype)


# ----------------------------------------------------------------------------
# The module
# ----------------------------------------------------------------------------
class BaseClassifier:
    def __init__(self, cuda_device=None, words_embed=None, len_vocab=0, len_embed=0):
        # cuda_device kept only for signature parity; device placement is implicit in JAX.
        self.cuda_device = cuda_device
        if words_embed is None:
            self.len_vocab = int(len_vocab)
            self.len_embed = int(len_embed)
            # nn.Embedding default init: weight ~ N(0, 1); deterministic key.
            key = jax.random.PRNGKey(0)
            self.embed_weight = jax.random.normal(
                key, (self.len_vocab, self.len_embed), dtype=jnp.float32
            )
        else:
            self.embed_weight = jnp.asarray(words_embed, dtype=jnp.float32)
            self.len_vocab, self.len_embed = self.embed_weight.shape
            # frozen weights (requires_grad=False equivalent: never updated here)

    def embed(self, ids):
        """nn.Embedding forward: int ids [...,] -> embeddings [..., len_embed]."""
        return embed_lookup(self.embed_weight, ids)

    def forward(self, *input):
        # TODO(synk): forward is abstract in the reference module; subclasses must define it.
        raise NotImplementedError("You should use child class")

    def predict_proba(self, *input):
        logits = self.forward(*input)
        scores = softmax_last_dim(logits)
        # Match the PyTorch reference: return a numpy array.
        return np.asarray(jax.device_get(scores))

    def predict(self, *input):
        # argmax(softmax(x)) == argmax(x): argmax the logits on device, skip softmax + host softmax.
        logits = self.forward(*input)
        return np.asarray(jax.device_get(jnp.argmax(logits, axis=-1)))


class _DemoLogitsClassifier(BaseClassifier):
    """Trivial child used only to exercise predict_proba/predict: forward = identity on logits."""

    def forward(self, logits):
        return logits


# ----------------------------------------------------------------------------
# Demo / correctness check
# ----------------------------------------------------------------------------
if __name__ == "__main__":
    key = jax.random.PRNGKey(0)
    k_ids, k_logits = jax.random.split(key)

    # Small shapes: vocab=32, embed=128 (lane-dense), batch=2, seq=8, classes=16.
    V, E = 32, 128
    B, S = 2, 8
    C = 16

    clf = BaseClassifier(len_vocab=V, len_embed=E)
    ids = jax.random.randint(k_ids, (B, S), 0, V, dtype=jnp.int32)

    # Embedding lookup kernel (pure copies -> bit-exact vs. reference gather)
    emb = clf.embed(ids)
    emb = jax.block_until_ready(emb)
    emb_ref = jnp.take(clf.embed_weight, ids.reshape(-1), axis=0).reshape(B, S, E)
    assert emb.shape == (B, S, E)
    np.testing.assert_allclose(np.asarray(emb), np.asarray(emb_ref), rtol=0, atol=0)

    # predict_proba / predict path (softmax kernel) via a trivial concrete child
    logits = jax.random.normal(k_logits, (B, C), dtype=jnp.float32)
    demo = _DemoLogitsClassifier(len_vocab=V, len_embed=E)
    proba = demo.predict_proba(logits)
    proba_ref = np.asarray(jax.nn.softmax(logits, axis=-1))
    np.testing.assert_allclose(proba, proba_ref, rtol=1e-5, atol=1e-6)
    np.testing.assert_allclose(proba.sum(axis=-1), np.ones(B), rtol=1e-5, atol=1e-6)

    pred = demo.predict(logits)
    pred_ref = np.argmax(proba_ref, axis=-1)
    assert np.array_equal(pred, pred_ref)

    print("KERNEL_OK")
</pallas_src>

<mosaic_0001>
module attributes {stable_mosaic.version = 11 : i64} {
  func.func @_embed_gather_kernel(%arg0: i32, %arg1: memref<16xi32, #tpu.memory_space<smem>>, %arg2: memref<32x128xf32, #tpu.memory_space<vmem>>, %arg3: memref<16x128xf32, #tpu.memory_space<vmem>>) attributes {dimension_semantics = [#tpu.dimension_semantics<parallel>], iteration_bounds = array<i64: 1>, scalar_prefetch = 1 : i64, scratch_operands = 0 : i64, tpu.core_type = #tpu.core_type<tc>, window_params = [{pipeline_mode = #tpu.pipeline_mode<synchronous>, transform_indices = @transform_0, window_bounds = array<i64: 32, 128>}, {transform_indices = @transform_1, window_bounds = array<i64: 16, 128>}]} {
    %c16_i32 = arith.constant 16 : i32
    %0 = arith.muli %arg0, %c16_i32 : i32
    %c0_i32 = arith.constant 0 : i32
    %c16_i32_0 = arith.constant 16 : i32
    %1 = arith.addi %c0_i32, %c16_i32_0 : i32
    %c1_i32 = arith.constant 1 : i32
    scf.for %arg4 = %c0_i32 to %1 step %c1_i32  : i32 {
      %2 = arith.addi %0, %arg4 : i32
      %3 = arith.index_cast %2 : i32 to index
      %4 = memref.load %arg1[%3] : memref<16xi32, #tpu.memory_space<smem>>
      %5 = arith.index_cast %4 : i32 to index
      %c0 = arith.constant 0 : index
      %6 = vector.load %arg2[%5, %c0] : memref<32x128xf32, #tpu.memory_space<vmem>>, vector<1x128xf32>
      %7 = arith.index_cast %arg4 : i32 to index
      %c0_2 = arith.constant 0 : index
      %8 = vector.load %arg3[%7, %c0_2] : memref<16x128xf32, #tpu.memory_space<vmem>>, vector<1x128xf32>
      tpu.vector_store %arg3[%7, %c0_2], %6 {strides = array<i32>} : memref<16x128xf32, #tpu.memory_space<vmem>>, vector<1x128xf32>,
    }
    %c16_i32_1 = arith.constant 16 : i32
    return
  }
  func.func @transform_0(%arg0: i32, %arg1: memref<16xi32, #tpu.memory_space<smem>>) -> (i32, i32) {
    %c0_i32 = arith.constant 0 : i32
    %c0_i32_0 = arith.constant 0 : i32
    %c0_i32_1 = arith.constant 0 : i32
    return %c0_i32, %c0_i32_0 : i32, i32
  }
  func.func @transform_1(%arg0: i32, %arg1: memref<16xi32, #tpu.memory_space<smem>>) -> (i32, i32) {
    %c0_i32 = arith.constant 0 : i32
    %c0_i32_0 = arith.constant 0 : i32
    return %arg0, %c0_i32 : i32, i32
  }
}

</mosaic_0001>

<bundles_post_ra>
// kernel: tpu_custom_call.1
= control target key start
LH: loop header
LB: loop body
LE: loop exit
PB: predicated region body
PF: predicated region fallthrough
CT: control target
= control target key end

     0   :  { %s140_s9 = smov [#allocation3]   ;;  %s175_s0 = inlined_call_operand.hbm [shape: s32[16], index: 0, kind: input, shape index: {}]   ;;  %s176_s1 = inlined_call_operand.hbm [shape: f32[32,128], index: 1, kind: input, shape index: {}]   ;;  %s177_s2 = inlined_call_operand.hbm [shape: f32[16,128], index: 2, kind: output, shape index: {}]  }
   0x1   :  { %8 = dma.hbm_to_smem %s175_s0, 16, %s140_s9, [#allocation2] }
   0x2   :  { %130 = dma.done.wait [#allocation2], 16 }
   0x3   :  { %131 = vsyncadd [#allocation2], 4294967280 }
   0x4   :  { %10 = sfence }
   0x5   :  { %11 = vsyncpa [#allocation5], 0 }
   0x6   :  { %12 = vsyncpa [#allocation6], 0  ;;  %s141_s12 = smov [#allocation4]  }
   0x7   :  { %s18_s13 = sshll.u32 %s141_s12, 4  ;;  %s19_s13 = int_to_ptr.vmem [resolvable:$true] %s18_s13 }
   0x8   :  { %s94_s14 = scalar_lea.vmem %s19_s13, 512  ;;  %p99_p1 = scmp.lt.s32.totalorder %s19_s13, %s19_s13 }
   0x9   :  { %p95_p0 = scmp.ne.s32.totalorder %s19_s13, %s94_s14  ;;  %p100_p2 = scmp.lt.s32.totalorder %s94_s14, %s94_s14 }
   0xb   :  { %p101_p3 = por %p100_p2, %p99_p1 }
   0xd   :  { %p102_p4 = pnand %p101_p3, %p95_p0 }
   0xf   :  { %105 = shalt.err (!%p102_p4)
}
  0x10   :  { %s142_s15 = smov 128   ;;  %s143_s16 = smov 8  }
  0x11   :  { %24 = dma.hbm_to_vmem [thread:$0]  %s176_s1, 512, %s19_s13, [#allocation5], %s142_s15, %s142_s15, %s143_s16  }
  0x12   :  { %132 = dma.done.wait [#allocation5], 512  }
  0x13   :  { %133 = vsyncadd [#allocation5], 4294966784  ;;  %s136_s18 = smov 0  }
  0x14 LB: > { %s36_s19 = sld [smem:[#allocation3 + %s138_s18]]  ;;  %s39_s21 = scalar_lea.vmem [#allocation7], %s138_s18  ;;  %s138_s18 = sphi %s136_s18, %s34_s18  }
  0x15   : > { %s34_s18 = sadd.s32 1, %s138_s18  }
  0x16   : > { %p31_p5 = scmp.ge.s32.totalorder %s34_s18, 16  }
  0x17   :  { %s144_s22 = smov (%p31_p5), [#allocation7]  }
  0x18   :  { %33 = sbr.rel (!%p31_p5) target bundleno = 20 (0x14), region = 37  ;;  %s46_s23 = sshll.u32 (%p31_p5), %s144_s22, 4  ;;  %s47_s23 = int_to_ptr.vmem [resolvable:$true] %s46_s23 }
  0x19   :  { %s106_s24 = scalar_lea.vmem (%p31_p5), %s47_s23, 256  ;;  %p111_p7 = scmp.lt.s32.totalorder (%p31_p5), %s47_s23, %s47_s23 }
  0x1a   : > { %s37_s20 = scalar_lea.vmem [#allocation4], %s36_s19  ;;  %p107_p6 = scmp.ne.s32.totalorder (%p31_p5), %s47_s23, %s106_s24 }
  0x1b   : > { %v38_v0 = vld [vmem:[%s37_s20] sm:$0x1]  ;;  %p112_p8 = scmp.lt.s32.totalorder (%p31_p5), %s106_s24, %s106_s24 }
  0x1c   : > { %40 = vst [vmem:[%s39_s21] sm:$0x1] %v38_v0 }
  0x1d   :  { %p113_p9 = por %p112_p8, %p111_p7 }
  0x1f   :  { %p114_p10 = pnand %p113_p9, %p107_p6 }
  0x21   :  { %117 = shalt.err (!%p114_p10)
}
  0x22   :  { %52 = dma.vmem_to_hbm [thread:$0]  %s47_s23, 256, %s177_s2, [#allocation6], %s142_s15, %s142_s15, %s143_s16  }
  0x23   :  { %134 = dma.done.wait [#allocation6], 256  }
  0x24   :  { %135 = vsyncadd [#allocation6], 4294967040 }
  0x25   :  { %56 = vsyncpa [#allocation5], 1 }
  0x26   :  { %57 = vsyncpa [#allocation6], 1 }

</bundles_post_ra>
